<compile_context>
chip_gen: v6e
topology: v6e:2x2x1
jax: 0.10.0
libtpu: 0.0.40
codegen_flags: <defaults>
</compile_context>

<pallas_src>
import jax
import jax.numpy as jnp
import numpy as np
from jax.experimental import pallas as pl
from jax.experimental.pallas import tpu as pltpu

# ----------------------------- hyper parameters (small) -----------------------------
TARGET_DIM = 4
NUM_TIME_FEAT = 4
CONTEXT_LENGTH = 8
PREDICTION_LENGTH = 4
LAGS_SEQ = [1, 2, 4]                       # sorted, unique (matches module assertion)
SHIFTED_LAGS = [l - 1 for l in LAGS_SEQ]   # PredictionNetwork.shifted_lags
HISTORY_LENGTH = CONTEXT_LENGTH + max(LAGS_SEQ)
NUM_CELLS = 32                             # rnn hidden size
COND_LENGTH = 32                           # conditioning_length
NUM_PARALLEL_SAMPLES = 2
EMBED_DIM = 1
INPUT_SIZE = len(LAGS_SEQ) * TARGET_DIM + TARGET_DIM * EMBED_DIM + NUM_TIME_FEAT   # 20
INPUT_PAD = 32                             # lane-pad GRU input features (zero-padded)
SERIES_LEN = 16                            # length of the auxiliary `series` ndarray
BATCH = 1                                  # original PredictionNetwork.forward assumes B == 1


# -------------------------- fused per-step math (kernel + reference) --------------------------
def _fused_math(enc2d, dec_x, aux, w_mx, biases):
    """Batched prediction-step chain (all K steps in one recurrence).

    enc2d : [C*K, INPUT_PAD] bf16  encoder GRU inputs, row = t*K + k
    dec_x : [K,   INPUT_PAD] bf16  decoder (1-step) GRU inputs (samples axis collapsed)
    aux   : [2, K, D]        f32   aux[0] = MeanScaler scale, aux[1] = folded additive tail
    w_mx  : [3, H, 3H]       bf16  [0]=wih (row-padded), [1]=whh, [2]=folded tail (lanes :D)
    biases: [2, 3H]          f32   row0 = b_r|b_z|b_in, row1 = b_hn (lanes :H)
    returns [K, D] f32 samples (already scaled)
    """
    K = dec_x.shape[0]
    C = enc2d.shape[0] // K
    H = NUM_CELLS
    D = aux.shape[-1]
    f32 = jnp.float32
    bf16 = jnp.bfloat16

    w_ih = w_mx[0]                                   # [INPUT_PAD, 3H] bf16
    w_hh = w_mx[1]                                   # [H, 3H]        bf16
    w_tail = w_mx[2]                                 # [H, 3H]        bf16 (only lanes :D used)

    bias_gi = biases[0:1, :]                         # [1, 3H]
    b_hn = jnp.broadcast_to(biases[1:2, 0:H], (K, H))   # hoisted broadcast (no per-iter re-emit)

    # ---- encoder GRU (PyTorch gate order r,z,n); input projection hoisted: ONE fused-gate
    #      bf16 matmul over all K steps x C timesteps, input biases folded in once. ----
    gi = jnp.dot(enc2d, w_ih, preferred_element_type=f32) + bias_gi      # [C*K, 3H] f32

    h = jnp.zeros((K, H), f32)
    for t in range(C):                               # static unroll, C == context_length == 8
        gh = jnp.dot(h.astype(bf16), w_hh, preferred_element_type=f32)   # ONE matmul / step
        gi_t = gi[t * K:(t + 1) * K, :]              # contiguous rows of step t
        r = jax.nn.sigmoid(gi_t[:, 0:H] + gh[:, 0:H])
        z = jax.nn.sigmoid(gi_t[:, H:2 * H] + gh[:, H:2 * H])
        n = jnp.tanh(gi_t[:, 2 * H:3 * H] + r * (gh[:, 2 * H:3 * H] + b_hn))
        h = (1.0 - z) * n + z * h                    # final h == begin_states (outputs unused)

    # ---- single decoder GRU step (samples axis collapsed: inputs identical across S) ----
    di = jnp.dot(dec_x, w_ih, preferred_element_type=f32) + bias_gi      # [K, 3H]
    dh = jnp.dot(h.astype(bf16), w_hh, preferred_element_type=f32)       # [K, 3H]
    r = jax.nn.sigmoid(di[:, 0:H] + dh[:, 0:H])
    z = jax.nn.sigmoid(di[:, H:2 * H] + dh[:, H:2 * H])
    n = jnp.tanh(di[:, 2 * H:3 * H] + r * (dh[:, 2 * H:3 * H] + b_hn))
    rnn_out = (1.0 - z) * n + z * h                                      # [K, H]

    # ---- folded tail: (weight1*rnn_out + weight2*freq) @ proj @ samp, scaled.
    #      weight1*(w_proj@w_samp) lives in w_tail; the weight2/Conv_FT-proxy/bias part is the
    #      pre-computed additive term aux[1] (already scaled). ----
    samp96 = jnp.dot(rnn_out.astype(bf16), w_tail, preferred_element_type=f32)   # [K, 3H]
    samp = samp96[:, 0:D] * aux[0] + aux[1]
    return samp


def fused_prediction_kernel(enc_x_ref, dec_x_ref, aux_ref, w_mx_ref, bias_ref, out_ref):
    out_ref[...] = _fused_math(enc_x_ref[...], dec_x_ref[...], aux_ref[...],
                               w_mx_ref[...], bias_ref[...])


def fused_step(enc_x, dec_x, aux, w_mx, biases):
    P, D = aux.shape[1], aux.shape[2]

    def full_spec(a):
        nd = a.ndim
        # block == full array dims -> (8,128) rule satisfied for every (small) operand
        return pl.BlockSpec(a.shape, lambda i, _n=nd: (0,) * _n)

    return pl.pallas_call(
        fused_prediction_kernel,
        out_shape=jax.ShapeDtypeStruct((P, D), jnp.float32),
        grid_spec=pltpu.PrefetchScalarGridSpec(
            num_scalar_prefetch=0,
            grid=(1,),   # single grid step: one serial recurrence chain on all generations
            in_specs=[full_spec(enc_x), full_spec(dec_x), full_spec(aux),
                      full_spec(w_mx), full_spec(biases)],
            out_specs=pl.BlockSpec((P, D), lambda i: (0, 0)),
        ),
        compiler_params=pltpu.CompilerParams(dimension_semantics=("arbitrary",)),
    )(enc_x, dec_x, aux, w_mx, biases)


def _fused_step_ref(enc_x, dec_x, aux, w_mx, biases):
    # pure-jnp twin of the fused Pallas kernel (identical math, correctness reference)
    return _fused_math(enc_x, dec_x, aux, w_mx, biases)


# ----------------------------- PredictionNetwork.forward (glue + kernel) -----------------------------
def prediction_forward(params, series, target_dimension_indicator, past_time_feat,
                       past_target_cdf, past_observed_values, past_is_pad,
                       future_time_feat, use_pallas=True):
    assert past_target_cdf.shape[0] == 1, "original PredictionNetwork.forward assumes batch == 1"
    P, C, D = PREDICTION_LENGTH, CONTEXT_LENGTH, TARGET_DIM
    S = NUM_PARALLEL_SAMPLES
    H = NUM_CELLS
    n_lags = len(LAGS_SEQ)
    hist = past_target_cdf.shape[1]
    bf16 = jnp.bfloat16

    # series ndarray [D, L] -> [1, L, D]; only its last P values are ever appended to
    # past_target_cdf (the reference appends series values, NOT generated samples, which is
    # exactly what makes the 4 prediction steps independent and batchable).
    series_t = jnp.transpose(series, (1, 0))[None, :, :]
    series_tail = series_t[:, -P:, :]                                      # [1, P, D]

    # decoder time features: original tiles future_time_feat[:, :lags_seq[1], :]; only rows
    # 0..P-1 are consumed (repeated_time_feat[:, k:k+1, :]).
    pat = future_time_feat[:, :LAGS_SEQ[1], :]
    reps = -(-P // LAGS_SEQ[1])
    dec_tf = jnp.tile(pat, (1, reps, 1))[0, :P, :]                         # [P, NUM_TIME_FEAT]

    # encoder time features: original tiles past_time_feat[:, :lags_seq[1], :] to length 882;
    # only the last context_length rows are consumed, which equal a direct context-length tile.
    # TODO(synk): dataset-specific 882-length time-feature tiling replaced by its context slice.
    enc_tf = jnp.tile(past_time_feat[:, :LAGS_SEQ[1], :], (1, C // LAGS_SEQ[1], 1))  # [1, C, NTF]

    obs = jnp.minimum(past_observed_values, 1.0 - past_is_pad[..., None])
    obs_ctx = obs[:, -C:, :]                                               # [1, C, D] (fixed)

    # step-k target history = first (hist + k) rows of `full`
    full = jnp.concatenate([past_target_cdf, series_tail], axis=1)[0]      # [hist + P, D]

    # per-step context windows (MeanScaler + Conv_FT proxy): full[hist+k-C : hist+k]
    ctx = jnp.stack([full[hist + k - C: hist + k, :] for k in range(P)], axis=0)     # [P, C, D]

    # MeanScaler(keepdim=True) — plain jnp; XLA fuses the glue.
    # TODO(synk): GluonTS MeanScaler's batch-level default_scale fallback not reproduced.
    num = jnp.sum(jnp.abs(ctx) * obs_ctx, axis=1)                          # [P, D]
    den = jnp.sum(obs_ctx, axis=1)                                         # [1, D]
    scale = num / jnp.maximum(den, 1.0)
    scale = jnp.where(scale > 0.0, scale, 1.0)                             # [P, D]

    # embedding of the target-dimension indicator (shared by encoder and decoder rows)
    emb = params["embed"][target_dimension_indicator[0]].reshape(-1)       # [D * EMBED_DIM]

    # ---- encoder GRU inputs, one row per (timestep, prediction step): [C*P, INPUT_PAD] bf16 ----
    enc_lags = jnp.stack(
        [jnp.stack([full[hist + k - lag - C: hist + k - lag, :] for lag in LAGS_SEQ], axis=-1)
         for k in range(P)], axis=0)                                       # [P, C, D, n_lags]
    enc_input_lags = (enc_lags / scale[:, None, :, None]).reshape(P, C, D * n_lags)
    enc_x = jnp.concatenate(
        [enc_input_lags,
         jnp.broadcast_to(emb[None, None, :], (P, C, emb.shape[0])),
         jnp.broadcast_to(enc_tf, (P, C, NUM_TIME_FEAT))], axis=-1)        # [P, C, INPUT_SIZE]
    enc_x = jnp.transpose(enc_x, (1, 0, 2)).reshape(C * P, INPUT_SIZE)     # row = t*P + k
    enc_x = jnp.pad(enc_x, ((0, 0), (0, INPUT_PAD - INPUT_SIZE))).astype(bf16)

    # ---- decoder (1-step) GRU inputs: [P, INPUT_PAD] bf16 (identical across parallel samples,
    #      because repeat_interleave of a batch-1 tensor produces identical copies) ----
    dec_lags = jnp.stack(
        [jnp.stack([full[hist + k - lag - 1, :] for lag in SHIFTED_LAGS], axis=-1)
         for k in range(P)], axis=0)                                       # [P, D, n_lags]
    dec_feat = jnp.concatenate(
        [(dec_lags / scale[:, :, None]).reshape(P, D * n_lags),
         jnp.broadcast_to(emb[None, :], (P, emb.shape[0])),
         dec_tf], axis=-1)                                                 # [P, INPUT_SIZE]
    dec_x = jnp.pad(dec_feat, ((0, 0), (0, INPUT_PAD - INPUT_SIZE))).astype(bf16)

    # ---- Conv_FT proxy + distr-args projection + (linear) diffusion-sample proxy, folded ----
    # TODO(synk): Conv_FT (frequency-domain conv) source not provided; proxy = time-mean + linear.
    # TODO(synk): GaussianDiffusion / EpsilonTheta reverse diffusion source not provided;
    # deterministic conditioned projection (times scale) stands in for diffusion.sample(cond).
    fmean = jnp.mean(ctx, axis=1)                                          # [P, D]
    w1 = params["weight1"][0, 0]
    w2 = params["weight2"][0, 0]
    w_pd = jnp.dot(params["w_proj"], params["w_samp"])                     # [H, D]
    freq = jnp.dot(fmean, params["w_fre"]) + params["b_fre"]               # [P, H]
    extra = (w2 * jnp.dot(freq, w_pd)
             + jnp.dot(params["b_proj"], w_pd) + params["b_samp"]) * scale  # [P, D]
    aux = jnp.stack([scale, extra], axis=0)                                # [2, P, D] f32

    # ---- pack GRU weights (+ folded tail) into one bf16 slab and all biases into one f32 slab
    #      -> 5 HBM->VMEM DMAs total instead of ~21 ----
    wih = jnp.concatenate([params["wih_r"], params["wih_z"], params["wih_n"]], axis=1)
    wih = jnp.pad(wih, ((0, INPUT_PAD - INPUT_SIZE), (0, 0)))              # [32, 96]
    whh = jnp.concatenate([params["whh_r"], params["whh_z"], params["whh_n"]], axis=1)  # [32, 96]
    a_tail = jnp.pad(w1 * w_pd, ((0, 0), (0, 3 * H - D)))                  # [32, 96] (lanes :D)
    w_mx = jnp.stack([wih, whh, a_tail], axis=0).astype(bf16)              # [3, 32, 96] bf16
    biases = jnp.concatenate(
        [jnp.concatenate([params["b_r"], params["b_z"], params["b_in"]], axis=1),
         jnp.pad(params["b_hn"], ((0, 0), (0, 2 * H)))], axis=0)           # [2, 96] f32

    step_fn = fused_step if use_pallas else _fused_step_ref
    samp = step_fn(enc_x, dec_x, aux, w_mx, biases)                        # [P, D]

    # TODO(synk): deterministic diffusion proxy -> all parallel samples identical; broadcast S.
    # TODO(synk): CR_compensate source not provided (its `past_series` argument is empty in the
    # original code path); samples passed through unchanged.
    return jnp.broadcast_to(samp[None, None, :, :], (BATCH, S, P, D))


# --------------------------------- parameter init ----------------------------------------
def init_params(key):
    ks = jax.random.split(key, 19)
    s = 0.1
    H = NUM_CELLS
    return {
        "weight1": jax.random.uniform(ks[0], (1, 1), jnp.float32),
        "weight2": jax.random.uniform(ks[1], (1, 1), jnp.float32),
        # per-gate GRU weights (stored [in, out] so kernels compute x @ W; gate order r, z, n)
        "wih_r": s * jax.random.normal(ks[2], (INPUT_SIZE, H), jnp.float32),
        "wih_z": s * jax.random.normal(ks[3], (INPUT_SIZE, H), jnp.float32),
        "wih_n": s * jax.random.normal(ks[4], (INPUT_SIZE, H), jnp.float32),
        "whh_r": s * jax.random.normal(ks[5], (H, H), jnp.float32),
        "whh_z": s * jax.random.normal(ks[6], (H, H), jnp.float32),
        "whh_n": s * jax.random.normal(ks[7], (H, H), jnp.float32),
        "b_r": s * jax.random.normal(ks[8], (1, H), jnp.float32),    # b_ir + b_hr folded
        "b_z": s * jax.random.normal(ks[9], (1, H), jnp.float32),    # b_iz + b_hz folded
        "b_in": s * jax.random.normal(ks[10], (1, H), jnp.float32),
        "b_hn": s * jax.random.normal(ks[11], (1, H), jnp.float32),
        "embed": s * jax.random.normal(ks[12], (TARGET_DIM, EMBED_DIM), jnp.float32),
        "w_fre": s * jax.random.normal(ks[13], (TARGET_DIM, NUM_CELLS), jnp.float32),
        "b_fre": s * jax.random.normal(ks[14], (1, NUM_CELLS), jnp.float32),
        "w_proj": s * jax.random.normal(ks[15], (NUM_CELLS, COND_LENGTH), jnp.float32),
        "b_proj": s * jax.random.normal(ks[16], (1, COND_LENGTH), jnp.float32),
        "w_samp": s * jax.random.normal(ks[17], (COND_LENGTH, TARGET_DIM), jnp.float32),
        "b_samp": s * jax.random.normal(ks[18], (1, TARGET_DIM), jnp.float32),
    }


# --------------------------------------- main ---------------------------------------------
if __name__ == "__main__":
    key = jax.random.PRNGKey(0)
    k_param, k1, k2, k3, k4 = jax.random.split(key, 5)
    params = init_params(k_param)

    target_dimension_indicator = jnp.tile(
        jnp.arange(TARGET_DIM, dtype=jnp.int32)[None, :], (BATCH, 1))           # [1, 4]
    past_time_feat = jax.random.normal(k1, (BATCH, HISTORY_LENGTH, NUM_TIME_FEAT),
                                       jnp.float32)                             # [1, 12, 4]
    past_target_cdf = jnp.abs(jax.random.normal(k2, (BATCH, HISTORY_LENGTH, TARGET_DIM),
                                                jnp.float32)) + 0.1             # [1, 12, 4]
    past_observed_values = jnp.ones((BATCH, HISTORY_LENGTH, TARGET_DIM), jnp.float32)
    past_is_pad = jnp.zeros((BATCH, HISTORY_LENGTH), jnp.float32)
    future_time_feat = jax.random.normal(k3, (BATCH, PREDICTION_LENGTH, NUM_TIME_FEAT),
                                         jnp.float32)                           # [1, 4, 4]
    series = jnp.abs(jax.random.normal(k4, (TARGET_DIM, SERIES_LEN), jnp.float32)) + 0.1

    fwd = jax.jit(prediction_forward)
    samples = fwd(params, series, target_dimension_indicator, past_time_feat,
                  past_target_cdf, past_observed_values, past_is_pad, future_time_feat)
    samples = jax.block_until_ready(samples)

    assert samples.shape == (BATCH, NUM_PARALLEL_SAMPLES, PREDICTION_LENGTH, TARGET_DIM)
    assert bool(jnp.all(jnp.isfinite(samples)))

    # correctness check against the pure-jnp twin of the fused kernel
    ref = prediction_forward(params, series, target_dimension_indicator, past_time_feat,
                             past_target_cdf, past_observed_values, past_is_pad,
                             future_time_feat, use_pallas=False)
    np.testing.assert_allclose(np.asarray(samples), np.asarray(ref), rtol=5e-2, atol=5e-2)

    print("KERNEL_OK")
</pallas_src>

<mosaic_0001>
module attributes {stable_mosaic.version = 11 : i64} {
  func.func @fused_prediction_kernel(%arg0: i32, %arg1: memref<32x32xbf16, #tpu.memory_space<vmem>>, %arg2: memref<4x32xbf16, #tpu.memory_space<vmem>>, %arg3: memref<2x4x4xf32, #tpu.memory_space<vmem>>, %arg4: memref<3x32x96xbf16, #tpu.memory_space<vmem>>, %arg5: memref<2x96xf32, #tpu.memory_space<vmem>>, %arg6: memref<4x4xf32, #tpu.memory_space<vmem>>) attributes {dimension_semantics = [#tpu.dimension_semantics<arbitrary>], iteration_bounds = array<i64: 1>, scalar_prefetch = 0 : i64, scratch_operands = 0 : i64, tpu.core_type = #tpu.core_type<tc>, window_params = [{pipeline_mode = #tpu.pipeline_mode<synchronous>, transform_indices = @transform_0, window_bounds = array<i64: 32, 32>}, {pipeline_mode = #tpu.pipeline_mode<synchronous>, transform_indices = @transform_1, window_bounds = array<i64: 4, 32>}, {pipeline_mode = #tpu.pipeline_mode<synchronous>, transform_indices = @transform_2, window_bounds = array<i64: 2, 4, 4>}, {pipeline_mode = #tpu.pipeline_mode<synchronous>, transform_indices = @transform_3, window_bounds = array<i64: 3, 32, 96>}, {pipeline_mode = #tpu.pipeline_mode<synchronous>, transform_indices = @transform_4, window_bounds = array<i64: 2, 96>}, {pipeline_mode = #tpu.pipeline_mode<synchronous>, transform_indices = @transform_5, window_bounds = array<i64: 4, 4>}]} {
    %c0 = arith.constant 0 : index
    %c0_0 = arith.constant 0 : index
    %0 = vector.load %arg1[%c0, %c0_0] : memref<32x32xbf16, #tpu.memory_space<vmem>>, vector<32x32xbf16>
    %c0_1 = arith.constant 0 : index
    %c0_2 = arith.constant 0 : index
    %1 = vector.load %arg2[%c0_1, %c0_2] : memref<4x32xbf16, #tpu.memory_space<vmem>>, vector<4x32xbf16>
    %c0_3 = arith.constant 0 : index
    %c0_4 = arith.constant 0 : index
    %c0_5 = arith.constant 0 : index
    %2 = vector.load %arg3[%c0_3, %c0_4, %c0_5] : memref<2x4x4xf32, #tpu.memory_space<vmem>>, vector<2x4x4xf32>
    %c0_6 = arith.constant 0 : index
    %c0_7 = arith.constant 0 : index
    %c0_8 = arith.constant 0 : index
    %3 = vector.load %arg4[%c0_6, %c0_7, %c0_8] : memref<3x32x96xbf16, #tpu.memory_space<vmem>>, vector<3x32x96xbf16>
    %c0_9 = arith.constant 0 : index
    %c0_10 = arith.constant 0 : index
    %4 = vector.load %arg5[%c0_9, %c0_10] : memref<2x96xf32, #tpu.memory_space<vmem>>, vector<2x96xf32>
    %5 = vector.extract_strided_slice %3 {offsets = [0, 0, 0], sizes = [1, 32, 96], strides = [1, 1, 1]} : vector<3x32x96xbf16> to vector<1x32x96xbf16>
    %6 = vector.shape_cast %5 : vector<1x32x96xbf16> to vector<32x96xbf16>
    %7 = vector.extract_strided_slice %3 {offsets = [1, 0, 0], sizes = [1, 32, 96], strides = [1, 1, 1]} : vector<3x32x96xbf16> to vector<1x32x96xbf16>
    %8 = vector.shape_cast %7 : vector<1x32x96xbf16> to vector<32x96xbf16>
    %9 = vector.extract_strided_slice %3 {offsets = [2, 0, 0], sizes = [1, 32, 96], strides = [1, 1, 1]} : vector<3x32x96xbf16> to vector<1x32x96xbf16>
    %10 = vector.shape_cast %9 : vector<1x32x96xbf16> to vector<32x96xbf16>
    %11 = vector.extract_strided_slice %4 {offsets = [0, 0], sizes = [1, 96], strides = [1, 1]} : vector<2x96xf32> to vector<1x96xf32>
    %12 = vector.extract_strided_slice %4 {offsets = [1, 0], sizes = [1, 32], strides = [1, 1]} : vector<2x96xf32> to vector<1x32xf32>
    %13 = vector.shape_cast %12 : vector<1x32xf32> to vector<1x32xf32>
    %14 = vector.broadcast %13 : vector<1x32xf32> to vector<4x32xf32>
    %cst = arith.constant dense<0.000000e+00> : vector<32x96xf32>
    %15 = tpu.matmul %0, %6, %cst {dimension_numbers = #tpu.dot_dimension_numbers<[1], [0], [0], [1], [0, 0, 1, 1], [], []>} : vector<32x32xbf16>, vector<32x96xbf16>, vector<32x96xf32> -> vector<32x96xf32>
    %16 = vector.broadcast %11 : vector<1x96xf32> to vector<32x96xf32>
    %17 = arith.addf %15, %16 : vector<32x96xf32>
    %cst_11 = arith.constant 0.000000e+00 : f32
    %18 = vector.broadcast %cst_11 : f32 to vector<4x32xf32>
    %19 = arith.truncf %18 : vector<4x32xf32> to vector<4x32xbf16>
    %cst_12 = arith.constant dense<0.000000e+00> : vector<4x96xf32>
    %20 = tpu.matmul %19, %8, %cst_12 {dimension_numbers = #tpu.dot_dimension_numbers<[1], [0], [0], [1], [0, 0, 1, 1], [], []>} : vector<4x32xbf16>, vector<32x96xbf16>, vector<4x96xf32> -> vector<4x96xf32>
    %21 = vector.extract_strided_slice %17 {offsets = [0, 0], sizes = [4, 96], strides = [1, 1]} : vector<32x96xf32> to vector<4x96xf32>
    %22 = vector.extract_strided_slice %21 {offsets = [0, 0], sizes = [4, 32], strides = [1, 1]} : vector<4x96xf32> to vector<4x32xf32>
    %23 = vector.extract_strided_slice %20 {offsets = [0, 0], sizes = [4, 32], strides = [1, 1]} : vector<4x96xf32> to vector<4x32xf32>
    %24 = arith.addf %22, %23 : vector<4x32xf32>
    %25 = arith.negf %24 : vector<4x32xf32>
    %26 = math.exp %25 : vector<4x32xf32>
    %cst_13 = arith.constant 1.000000e+00 : f32
    %27 = vector.broadcast %cst_13 : f32 to vector<4x32xf32>
    %28 = arith.addf %27, %26 : vector<4x32xf32>
    %29 = arith.divf %27, %28 : vector<4x32xf32>
    %30 = vector.extract_strided_slice %21 {offsets = [0, 32], sizes = [4, 32], strides = [1, 1]} : vector<4x96xf32> to vector<4x32xf32>
    %31 = vector.extract_strided_slice %20 {offsets = [0, 32], sizes = [4, 32], strides = [1, 1]} : vector<4x96xf32> to vector<4x32xf32>
    %32 = arith.addf %30, %31 : vector<4x32xf32>
    %33 = arith.negf %32 : vector<4x32xf32>
    %34 = math.exp %33 : vector<4x32xf32>
    %cst_14 = arith.constant 1.000000e+00 : f32
    %35 = vector.broadcast %cst_14 : f32 to vector<4x32xf32>
    %36 = arith.addf %35, %34 : vector<4x32xf32>
    %37 = arith.divf %35, %36 : vector<4x32xf32>
    %38 = vector.extract_strided_slice %21 {offsets = [0, 64], sizes = [4, 32], strides = [1, 1]} : vector<4x96xf32> to vector<4x32xf32>
    %39 = vector.extract_strided_slice %20 {offsets = [0, 64], sizes = [4, 32], strides = [1, 1]} : vector<4x96xf32> to vector<4x32xf32>
    %40 = arith.addf %39, %14 : vector<4x32xf32>
    %41 = arith.mulf %29, %40 : vector<4x32xf32>
    %42 = arith.addf %38, %41 : vector<4x32xf32>
    %43 = math.tanh %42 : vector<4x32xf32>
    %cst_15 = arith.constant 1.000000e+00 : f32
    %44 = vector.broadcast %cst_15 : f32 to vector<4x32xf32>
    %45 = arith.subf %44, %37 : vector<4x32xf32>
    %46 = arith.mulf %45, %43 : vector<4x32xf32>
    %47 = arith.mulf %37, %18 : vector<4x32xf32>
    %48 = arith.addf %46, %47 : vector<4x32xf32>
    %49 = arith.truncf %48 : vector<4x32xf32> to vector<4x32xbf16>
    %cst_16 = arith.constant dense<0.000000e+00> : vector<4x96xf32>
    %50 = tpu.matmul %49, %8, %cst_16 {dimension_numbers = #tpu.dot_dimension_numbers<[1], [0], [0], [1], [0, 0, 1, 1], [], []>} : vector<4x32xbf16>, vector<32x96xbf16>, vector<4x96xf32> -> vector<4x96xf32>
    %51 = vector.extract_strided_slice %17 {offsets = [4, 0], sizes = [4, 96], strides = [1, 1]} : vector<32x96xf32> to vector<4x96xf32>
    %52 = vector.extract_strided_slice %51 {offsets = [0, 0], sizes = [4, 32], strides = [1, 1]} : vector<4x96xf32> to vector<4x32xf32>
    %53 = vector.extract_strided_slice %50 {offsets = [0, 0], sizes = [4, 32], strides = [1, 1]} : vector<4x96xf32> to vector<4x32xf32>
    %54 = arith.addf %52, %53 : vector<4x32xf32>
    %55 = arith.negf %54 : vector<4x32xf32>
    %56 = math.exp %55 : vector<4x32xf32>
    %cst_17 = arith.constant 1.000000e+00 : f32
    %57 = vector.broadcast %cst_17 : f32 to vector<4x32xf32>
    %58 = arith.addf %57, %56 : vector<4x32xf32>
    %59 = arith.divf %57, %58 : vector<4x32xf32>
    %60 = vector.extract_strided_slice %51 {offsets = [0, 32], sizes = [4, 32], strides = [1, 1]} : vector<4x96xf32> to vector<4x32xf32>
    %61 = vector.extract_strided_slice %50 {offsets = [0, 32], sizes = [4, 32], strides = [1, 1]} : vector<4x96xf32> to vector<4x32xf32>
    %62 = arith.addf %60, %61 : vector<4x32xf32>
    %63 = arith.negf %62 : vector<4x32xf32>
    %64 = math.exp %63 : vector<4x32xf32>
    %cst_18 = arith.constant 1.000000e+00 : f32
    %65 = vector.broadcast %cst_18 : f32 to vector<4x32xf32>
    %66 = arith.addf %65, %64 : vector<4x32xf32>
    %67 = arith.divf %65, %66 : vector<4x32xf32>
    %68 = vector.extract_strided_slice %51 {offsets = [0, 64], sizes = [4, 32], strides = [1, 1]} : vector<4x96xf32> to vector<4x32xf32>
    %69 = vector.extract_strided_slice %50 {offsets = [0, 64], sizes = [4, 32], strides = [1, 1]} : vector<4x96xf32> to vector<4x32xf32>
    %70 = arith.addf %69, %14 : vector<4x32xf32>
    %71 = arith.mulf %59, %70 : vector<4x32xf32>
    %72 = arith.addf %68, %71 : vector<4x32xf32>
    %73 = math.tanh %72 : vector<4x32xf32>
    %cst_19 = arith.constant 1.000000e+00 : f32
    %74 = vector.broadcast %cst_19 : f32 to vector<4x32xf32>
    %75 = arith.subf %74, %67 : vector<4x32xf32>
    %76 = arith.mulf %75, %73 : vector<4x32xf32>
    %77 = arith.mulf %67, %48 : vector<4x32xf32>
    %78 = arith.addf %76, %77 : vector<4x32xf32>
    %79 = arith.truncf %78 : vector<4x32xf32> to vector<4x32xbf16>
    %cst_20 = arith.constant dense<0.000000e+00> : vector<4x96xf32>
    %80 = tpu.matmul %79, %8, %cst_20 {dimension_numbers = #tpu.dot_dimension_numbers<[1], [0], [0], [1], [0, 0, 1, 1], [], []>} : vector<4x32xbf16>, vector<32x96xbf16>, vector<4x96xf32> -> vector<4x96xf32>
    %81 = vector.extract_strided_slice %17 {offsets = [8, 0], sizes = [4, 96], strides = [1, 1]} : vector<32x96xf32> to vector<4x96xf32>
    %82 = vector.extract_strided_slice %81 {offsets = [0, 0], sizes = [4, 32], strides = [1, 1]} : vector<4x96xf32> to vector<4x32xf32>
    %83 = vector.extract_strided_slice %80 {offsets = [0, 0], sizes = [4, 32], strides = [1, 1]} : vector<4x96xf32> to vector<4x32xf32>
    %84 = arith.addf %82, %83 : vector<4x32xf32>
    %85 = arith.negf %84 : vector<4x32xf32>
    %86 = math.exp %85 : vector<4x32xf32>
    %cst_21 = arith.constant 1.000000e+00 : f32
    %87 = vector.broadcast %cst_21 : f32 to vector<4x32xf32>
    %88 = arith.addf %87, %86 : vector<4x32xf32>
    %89 = arith.divf %87, %88 : vector<4x32xf32>
    %90 = vector.extract_strided_slice %81 {offsets = [0, 32], sizes = [4, 32], strides = [1, 1]} : vector<4x96xf32> to vector<4x32xf32>
    %91 = vector.extract_strided_slice %80 {offsets = [0, 32], sizes = [4, 32], strides = [1, 1]} : vector<4x96xf32> to vector<4x32xf32>
    %92 = arith.addf %90, %91 : vector<4x32xf32>
    %93 = arith.negf %92 : vector<4x32xf32>
    %94 = math.exp %93 : vector<4x32xf32>
    %cst_22 = arith.constant 1.000000e+00 : f32
    %95 = vector.broadcast %cst_22 : f32 to vector<4x32xf32>
    %96 = arith.addf %95, %94 : vector<4x32xf32>
    %97 = arith.divf %95, %96 : vector<4x32xf32>
    %98 = vector.extract_strided_slice %81 {offsets = [0, 64], sizes = [4, 32], strides = [1, 1]} : vector<4x96xf32> to vector<4x32xf32>
    %99 = vector.extract_strided_slice %80 {offsets = [0, 64], sizes = [4, 32], strides = [1, 1]} : vector<4x96xf32> to vector<4x32xf32>
    %100 = arith.addf %99, %14 : vector<4x32xf32>
    %101 = arith.mulf %89, %100 : vector<4x32xf32>
    %102 = arith.addf %98, %101 : vector<4x32xf32>
    %103 = math.tanh %102 : vector<4x32xf32>
    %cst_23 = arith.constant 1.000000e+00 : f32
    %104 = vector.broadcast %cst_23 : f32 to vector<4x32xf32>
    %105 = arith.subf %104, %97 : vector<4x32xf32>
    %106 = arith.mulf %105, %103 : vector<4x32xf32>
    %107 = arith.mulf %97, %78 : vector<4x32xf32>
    %108 = arith.addf %106, %107 : vector<4x32xf32>
    %109 = arith.truncf %108 : vector<4x32xf32> to vector<4x32xbf16>
    %cst_24 = arith.constant dense<0.000000e+00> : vector<4x96xf32>
    %110 = tpu.matmul %109, %8, %cst_24 {dimension_numbers = #tpu.dot_dimension_numbers<[1], [0], [0], [1], [0, 0, 1, 1], [], []>} : vector<4x32xbf16>, vector<32x96xbf16>, vector<4x96xf32> -> vector<4x96xf32>
    %111 = vector.extract_strided_slice %17 {offsets = [12, 0], sizes = [4, 96], strides = [1, 1]} : vector<32x96xf32> to vector<4x96xf32>
    %112 = vector.extract_strided_slice %111 {offsets = [0, 0], sizes = [4, 32], strides = [1, 1]} : vector<4x96xf32> to vector<4x32xf32>
    %113 = vector.extract_strided_slice %110 {offsets = [0, 0], sizes = [4, 32], strides = [1, 1]} : vector<4x96xf32> to vector<4x32xf32>
    %114 = arith.addf %112, %113 : vector<4x32xf32>
    %115 = arith.negf %114 : vector<4x32xf32>
    %116 = math.exp %115 : vector<4x32xf32>
    %cst_25 = arith.constant 1.000000e+00 : f32
    %117 = vector.broadcast %cst_25 : f32 to vector<4x32xf32>
    %118 = arith.addf %117, %116 : vector<4x32xf32>
    %119 = arith.divf %117, %118 : vector<4x32xf32>
    %120 = vector.extract_strided_slice %111 {offsets = [0, 32], sizes = [4, 32], strides = [1, 1]} : vector<4x96xf32> to vector<4x32xf32>
    %121 = vector.extract_strided_slice %110 {offsets = [0, 32], sizes = [4, 32], strides = [1, 1]} : vector<4x96xf32> to vector<4x32xf32>
    %122 = arith.addf %120, %121 : vector<4x32xf32>
    %123 = arith.negf %122 : vector<4x32xf32>
    %124 = math.exp %123 : vector<4x32xf32>
    %cst_26 = arith.constant 1.000000e+00 : f32
    %125 = vector.broadcast %cst_26 : f32 to vector<4x32xf32>
    %126 = arith.addf %125, %124 : vector<4x32xf32>
    %127 = arith.divf %125, %126 : vector<4x32xf32>
    %128 = vector.extract_strided_slice %111 {offsets = [0, 64], sizes = [4, 32], strides = [1, 1]} : vector<4x96xf32> to vector<4x32xf32>
    %129 = vector.extract_strided_slice %110 {offsets = [0, 64], sizes = [4, 32], strides = [1, 1]} : vector<4x96xf32> to vector<4x32xf32>
    %130 = arith.addf %129, %14 : vector<4x32xf32>
    %131 = arith.mulf %119, %130 : vector<4x32xf32>
    %132 = arith.addf %128, %131 : vector<4x32xf32>
    %133 = math.tanh %132 : vector<4x32xf32>
    %cst_27 = arith.constant 1.000000e+00 : f32
    %134 = vector.broadcast %cst_27 : f32 to vector<4x32xf32>
    %135 = arith.subf %134, %127 : vector<4x32xf32>
    %136 = arith.mulf %135, %133 : vector<4x32xf32>
    %137 = arith.mulf %127, %108 : vector<4x32xf32>
    %138 = arith.addf %136, %137 : vector<4x32xf32>
    %139 = arith.truncf %138 : vector<4x32xf32> to vector<4x32xbf16>
    %cst_28 = arith.constant dense<0.000000e+00> : vector<4x96xf32>
    %140 = tpu.matmul %139, %8, %cst_28 {dimension_numbers = #tpu.dot_dimension_numbers<[1], [0], [0], [1], [0, 0, 1, 1], [], []>} : vector<4x32xbf16>, vector<32x96xbf16>, vector<4x96xf32> -> vector<4x96xf32>
    %141 = vector.extract_strided_slice %17 {offsets = [16, 0], sizes = [4, 96], strides = [1, 1]} : vector<32x96xf32> to vector<4x96xf32>
    %142 = vector.extract_strided_slice %141 {offsets = [0, 0], sizes = [4, 32], strides = [1, 1]} : vector<4x96xf32> to vector<4x32xf32>
    %143 = vector.extract_strided_slice %140 {offsets = [0, 0], sizes = [4, 32], strides = [1, 1]} : vector<4x96xf32> to vector<4x32xf32>
    %144 = arith.addf %142, %143 : vector<4x32xf32>
    %145 = arith.negf %144 : vector<4x32xf32>
    %146 = math.exp %145 : vector<4x32xf32>
    %cst_29 = arith.constant 1.000000e+00 : f32
    %147 = vector.broadcast %cst_29 : f32 to vector<4x32xf32>
    %148 = arith.addf %147, %146 : vector<4x32xf32>
    %149 = arith.divf %147, %148 : vector<4x32xf32>
    %150 = vector.extract_strided_slice %141 {offsets = [0, 32], sizes = [4, 32], strides = [1, 1]} : vector<4x96xf32> to vector<4x32xf32>
    %151 = vector.extract_strided_slice %140 {offsets = [0, 32], sizes = [4, 32], strides = [1, 1]} : vector<4x96xf32> to vector<4x32xf32>
    %152 = arith.addf %150, %151 : vector<4x32xf32>
    %153 = arith.negf %152 : vector<4x32xf32>
    %154 = math.exp %153 : vector<4x32xf32>
    %cst_30 = arith.constant 1.000000e+00 : f32
    %155 = vector.broadcast %cst_30 : f32 to vector<4x32xf32>
    %156 = arith.addf %155, %154 : vector<4x32xf32>
    %157 = arith.divf %155, %156 : vector<4x32xf32>
    %158 = vector.extract_strided_slice %141 {offsets = [0, 64], sizes = [4, 32], strides = [1, 1]} : vector<4x96xf32> to vector<4x32xf32>
    %159 = vector.extract_strided_slice %140 {offsets = [0, 64], sizes = [4, 32], strides = [1, 1]} : vector<4x96xf32> to vector<4x32xf32>
    %160 = arith.addf %159, %14 : vector<4x32xf32>
    %161 = arith.mulf %149, %160 : vector<4x32xf32>
    %162 = arith.addf %158, %161 : vector<4x32xf32>
    %163 = math.tanh %162 : vector<4x32xf32>
    %cst_31 = arith.constant 1.000000e+00 : f32
    %164 = vector.broadcast %cst_31 : f32 to vector<4x32xf32>
    %165 = arith.subf %164, %157 : vector<4x32xf32>
    %166 = arith.mulf %165, %163 : vector<4x32xf32>
    %167 = arith.mulf %157, %138 : vector<4x32xf32>
    %168 = arith.addf %166, %167 : vector<4x32xf32>
    %169 = arith.truncf %168 : vector<4x32xf32> to vector<4x32xbf16>
    %cst_32 = arith.constant dense<0.000000e+00> : vector<4x96xf32>
    %170 = tpu.matmul %169, %8, %cst_32 {dimension_numbers = #tpu.dot_dimension_numbers<[1], [0], [0], [1], [0, 0, 1, 1], [], []>} : vector<4x32xbf16>, vector<32x96xbf16>, vector<4x96xf32> -> vector<4x96xf32>
    %171 = vector.extract_strided_slice %17 {offsets = [20, 0], sizes = [4, 96], strides = [1, 1]} : vector<32x96xf32> to vector<4x96xf32>
    %172 = vector.extract_strided_slice %171 {offsets = [0, 0], sizes = [4, 32], strides = [1, 1]} : vector<4x96xf32> to vector<4x32xf32>
    %173 = vector.extract_strided_slice %170 {offsets = [0, 0], sizes = [4, 32], strides = [1, 1]} : vector<4x96xf32> to vector<4x32xf32>
    %174 = arith.addf %172, %173 : vector<4x32xf32>
    %175 = arith.negf %174 : vector<4x32xf32>
    %176 = math.exp %175 : vector<4x32xf32>
    %cst_33 = arith.constant 1.000000e+00 : f32
    %177 = vector.broadcast %cst_33 : f32 to vector<4x32xf32>
    %178 = arith.addf %177, %176 : vector<4x32xf32>
    %179 = arith.divf %177, %178 : vector<4x32xf32>
    %180 = vector.extract_strided_slice %171 {offsets = [0, 32], sizes = [4, 32], strides = [1, 1]} : vector<4x96xf32> to vector<4x32xf32>
    %181 = vector.extract_strided_slice %170 {offsets = [0, 32], sizes = [4, 32], strides = [1, 1]} : vector<4x96xf32> to vector<4x32xf32>
    %182 = arith.addf %180, %181 : vector<4x32xf32>
    %183 = arith.negf %182 : vector<4x32xf32>
    %184 = math.exp %183 : vector<4x32xf32>
    %cst_34 = arith.constant 1.000000e+00 : f32
    %185 = vector.broadcast %cst_34 : f32 to vector<4x32xf32>
    %186 = arith.addf %185, %184 : vector<4x32xf32>
    %187 = arith.divf %185, %186 : vector<4x32xf32>
    %188 = vector.extract_strided_slice %171 {offsets = [0, 64], sizes = [4, 32], strides = [1, 1]} : vector<4x96xf32> to vector<4x32xf32>
    %189 = vector.extract_strided_slice %170 {offsets = [0, 64], sizes = [4, 32], strides = [1, 1]} : vector<4x96xf32> to vector<4x32xf32>
    %190 = arith.addf %189, %14 : vector<4x32xf32>
    %191 = arith.mulf %179, %190 : vector<4x32xf32>
    %192 = arith.addf %188, %191 : vector<4x32xf32>
    %193 = math.tanh %192 : vector<4x32xf32>
    %cst_35 = arith.constant 1.000000e+00 : f32
    %194 = vector.broadcast %cst_35 : f32 to vector<4x32xf32>
    %195 = arith.subf %194, %187 : vector<4x32xf32>
    %196 = arith.mulf %195, %193 : vector<4x32xf32>
    %197 = arith.mulf %187, %168 : vector<4x32xf32>
    %198 = arith.addf %196, %197 : vector<4x32xf32>
    %199 = arith.truncf %198 : vector<4x32xf32> to vector<4x32xbf16>
    %cst_36 = arith.constant dense<0.000000e+00> : vector<4x96xf32>
    %200 = tpu.matmul %199, %8, %cst_36 {dimension_numbers = #tpu.dot_dimension_numbers<[1], [0], [0], [1], [0, 0, 1, 1], [], []>} : vector<4x32xbf16>, vector<32x96xbf16>, vector<4x96xf32> -> vector<4x96xf32>
    %201 = vector.extract_strided_slice %17 {offsets = [24, 0], sizes = [4, 96], strides = [1, 1]} : vector<32x96xf32> to vector<4x96xf32>
    %202 = vector.extract_strided_slice %201 {offsets = [0, 0], sizes = [4, 32], strides = [1, 1]} : vector<4x96xf32> to vector<4x32xf32>
    %203 = vector.extract_strided_slice %200 {offsets = [0, 0], sizes = [4, 32], strides = [1, 1]} : vector<4x96xf32> to vector<4x32xf32>
    %204 = arith.addf %202, %203 : vector<4x32xf32>
    %205 = arith.negf %204 : vector<4x32xf32>
    %206 = math.exp %205 : vector<4x32xf32>
    %cst_37 = arith.constant 1.000000e+00 : f32
    %207 = vector.broadcast %cst_37 : f32 to vector<4x32xf32>
    %208 = arith.addf %207, %206 : vector<4x32xf32>
    %209 = arith.divf %207, %208 : vector<4x32xf32>
    %210 = vector.extract_strided_slice %201 {offsets = [0, 32], sizes = [4, 32], strides = [1, 1]} : vector<4x96xf32> to vector<4x32xf32>
    %211 = vector.extract_strided_slice %200 {offsets = [0, 32], sizes = [4, 32], strides = [1, 1]} : vector<4x96xf32> to vector<4x32xf32>
    %212 = arith.addf %210, %211 : vector<4x32xf32>
    %213 = arith.negf %212 : vector<4x32xf32>
    %214 = math.exp %213 : vector<4x32xf32>
    %cst_38 = arith.constant 1.000000e+00 : f32
    %215 = vector.broadcast %cst_38 : f32 to vector<4x32xf32>
    %216 = arith.addf %215, %214 : vector<4x32xf32>
    %217 = arith.divf %215, %216 : vector<4x32xf32>
    %218 = vector.extract_strided_slice %201 {offsets = [0, 64], sizes = [4, 32], strides = [1, 1]} : vector<4x96xf32> to vector<4x32xf32>
    %219 = vector.extract_strided_slice %200 {offsets = [0, 64], sizes = [4, 32], strides = [1, 1]} : vector<4x96xf32> to vector<4x32xf32>
    %220 = arith.addf %219, %14 : vector<4x32xf32>
    %221 = arith.mulf %209, %220 : vector<4x32xf32>
    %222 = arith.addf %218, %221 : vector<4x32xf32>
    %223 = math.tanh %222 : vector<4x32xf32>
    %cst_39 = arith.constant 1.000000e+00 : f32
    %224 = vector.broadcast %cst_39 : f32 to vector<4x32xf32>
    %225 = arith.subf %224, %217 : vector<4x32xf32>
    %226 = arith.mulf %225, %223 : vector<4x32xf32>
    %227 = arith.mulf %217, %198 : vector<4x32xf32>
    %228 = arith.addf %226, %227 : vector<4x32xf32>
    %229 = arith.truncf %228 : vector<4x32xf32> to vector<4x32xbf16>
    %cst_40 = arith.constant dense<0.000000e+00> : vector<4x96xf32>
    %230 = tpu.matmul %229, %8, %cst_40 {dimension_numbers = #tpu.dot_dimension_numbers<[1], [0], [0], [1], [0, 0, 1, 1], [], []>} : vector<4x32xbf16>, vector<32x96xbf16>, vector<4x96xf32> -> vector<4x96xf32>
    %231 = vector.extract_strided_slice %17 {offsets = [28, 0], sizes = [4, 96], strides = [1, 1]} : vector<32x96xf32> to vector<4x96xf32>
    %232 = vector.extract_strided_slice %231 {offsets = [0, 0], sizes = [4, 32], strides = [1, 1]} : vector<4x96xf32> to vector<4x32xf32>
    %233 = vector.extract_strided_slice %230 {offsets = [0, 0], sizes = [4, 32], strides = [1, 1]} : vector<4x96xf32> to vector<4x32xf32>
    %234 = arith.addf %232, %233 : vector<4x32xf32>
    %235 = arith.negf %234 : vector<4x32xf32>
    %236 = math.exp %235 : vector<4x32xf32>
    %cst_41 = arith.constant 1.000000e+00 : f32
    %237 = vector.broadcast %cst_41 : f32 to vector<4x32xf32>
    %238 = arith.addf %237, %236 : vector<4x32xf32>
    %239 = arith.divf %237, %238 : vector<4x32xf32>
    %240 = vector.extract_strided_slice %231 {offsets = [0, 32], sizes = [4, 32], strides = [1, 1]} : vector<4x96xf32> to vector<4x32xf32>
    %241 = vector.extract_strided_slice %230 {offsets = [0, 32], sizes = [4, 32], strides = [1, 1]} : vector<4x96xf32> to vector<4x32xf32>
    %242 = arith.addf %240, %241 : vector<4x32xf32>
    %243 = arith.negf %242 : vector<4x32xf32>
    %244 = math.exp %243 : vector<4x32xf32>
    %cst_42 = arith.constant 1.000000e+00 : f32
    %245 = vector.broadcast %cst_42 : f32 to vector<4x32xf32>
    %246 = arith.addf %245, %244 : vector<4x32xf32>
    %247 = arith.divf %245, %246 : vector<4x32xf32>
    %248 = vector.extract_strided_slice %231 {offsets = [0, 64], sizes = [4, 32], strides = [1, 1]} : vector<4x96xf32> to vector<4x32xf32>
    %249 = vector.extract_strided_slice %230 {offsets = [0, 64], sizes = [4, 32], strides = [1, 1]} : vector<4x96xf32> to vector<4x32xf32>
    %250 = arith.addf %249, %14 : vector<4x32xf32>
    %251 = arith.mulf %239, %250 : vector<4x32xf32>
    %252 = arith.addf %248, %251 : vector<4x32xf32>
    %253 = math.tanh %252 : vector<4x32xf32>
    %cst_43 = arith.constant 1.000000e+00 : f32
    %254 = vector.broadcast %cst_43 : f32 to vector<4x32xf32>
    %255 = arith.subf %254, %247 : vector<4x32xf32>
    %256 = arith.mulf %255, %253 : vector<4x32xf32>
    %257 = arith.mulf %247, %228 : vector<4x32xf32>
    %258 = arith.addf %256, %257 : vector<4x32xf32>
    %cst_44 = arith.constant dense<0.000000e+00> : vector<4x96xf32>
    %259 = tpu.matmul %1, %6, %cst_44 {dimension_numbers = #tpu.dot_dimension_numbers<[1], [0], [0], [1], [0, 0, 1, 1], [], []>} : vector<4x32xbf16>, vector<32x96xbf16>, vector<4x96xf32> -> vector<4x96xf32>
    %260 = vector.broadcast %11 : vector<1x96xf32> to vector<4x96xf32>
    %261 = arith.addf %259, %260 : vector<4x96xf32>
    %262 = arith.truncf %258 : vector<4x32xf32> to vector<4x32xbf16>
    %cst_45 = arith.constant dense<0.000000e+00> : vector<4x96xf32>
    %263 = tpu.matmul %262, %8, %cst_45 {dimension_numbers = #tpu.dot_dimension_numbers<[1], [0], [0], [1], [0, 0, 1, 1], [], []>} : vector<4x32xbf16>, vector<32x96xbf16>, vector<4x96xf32> -> vector<4x96xf32>
    %264 = vector.extract_strided_slice %261 {offsets = [0, 0], sizes = [4, 32], strides = [1, 1]} : vector<4x96xf32> to vector<4x32xf32>
    %265 = vector.extract_strided_slice %263 {offsets = [0, 0], sizes = [4, 32], strides = [1, 1]} : vector<4x96xf32> to vector<4x32xf32>
    %266 = arith.addf %264, %265 : vector<4x32xf32>
    %267 = arith.negf %266 : vector<4x32xf32>
    %268 = math.exp %267 : vector<4x32xf32>
    %cst_46 = arith.constant 1.000000e+00 : f32
    %269 = vector.broadcast %cst_46 : f32 to vector<4x32xf32>
    %270 = arith.addf %269, %268 : vector<4x32xf32>
    %271 = arith.divf %269, %270 : vector<4x32xf32>
    %272 = vector.extract_strided_slice %261 {offsets = [0, 32], sizes = [4, 32], strides = [1, 1]} : vector<4x96xf32> to vector<4x32xf32>
    %273 = vector.extract_strided_slice %263 {offsets = [0, 32], sizes = [4, 32], strides = [1, 1]} : vector<4x96xf32> to vector<4x32xf32>
    %274 = arith.addf %272, %273 : vector<4x32xf32>
    %275 = arith.negf %274 : vector<4x32xf32>
    %276 = math.exp %275 : vector<4x32xf32>
    %cst_47 = arith.constant 1.000000e+00 : f32
    %277 = vector.broadcast %cst_47 : f32 to vector<4x32xf32>
    %278 = arith.addf %277, %276 : vector<4x32xf32>
    %279 = arith.divf %277, %278 : vector<4x32xf32>
    %280 = vector.extract_strided_slice %261 {offsets = [0, 64], sizes = [4, 32], strides = [1, 1]} : vector<4x96xf32> to vector<4x32xf32>
    %281 = vector.extract_strided_slice %263 {offsets = [0, 64], sizes = [4, 32], strides = [1, 1]} : vector<4x96xf32> to vector<4x32xf32>
    %282 = arith.addf %281, %14 : vector<4x32xf32>
    %283 = arith.mulf %271, %282 : vector<4x32xf32>
    %284 = arith.addf %280, %283 : vector<4x32xf32>
    %285 = math.tanh %284 : vector<4x32xf32>
    %cst_48 = arith.constant 1.000000e+00 : f32
    %286 = vector.broadcast %cst_48 : f32 to vector<4x32xf32>
    %287 = arith.subf %286, %279 : vector<4x32xf32>
    %288 = arith.mulf %287, %285 : vector<4x32xf32>
    %289 = arith.mulf %279, %258 : vector<4x32xf32>
    %290 = arith.addf %288, %289 : vector<4x32xf32>
    %291 = arith.truncf %290 : vector<4x32xf32> to vector<4x32xbf16>
    %cst_49 = arith.constant dense<0.000000e+00> : vector<4x96xf32>
    %292 = tpu.matmul %291, %10, %cst_49 {dimension_numbers = #tpu.dot_dimension_numbers<[1], [0], [0], [1], [0, 0, 1, 1], [], []>} : vector<4x32xbf16>, vector<32x96xbf16>, vector<4x96xf32> -> vector<4x96xf32>
    %293 = vector.extract_strided_slice %292 {offsets = [0, 0], sizes = [4, 4], strides = [1, 1]} : vector<4x96xf32> to vector<4x4xf32>
    %294 = vector.extract_strided_slice %2 {offsets = [0, 0, 0], sizes = [1, 4, 4], strides = [1, 1, 1]} : vector<2x4x4xf32> to vector<1x4x4xf32>
    %295 = vector.shape_cast %294 : vector<1x4x4xf32> to vector<4x4xf32>
    %296 = arith.mulf %293, %295 : vector<4x4xf32>
    %297 = vector.extract_strided_slice %2 {offsets = [1, 0, 0], sizes = [1, 4, 4], strides = [1, 1, 1]} : vector<2x4x4xf32> to vector<1x4x4xf32>
    %298 = vector.shape_cast %297 : vector<1x4x4xf32> to vector<4x4xf32>
    %299 = arith.addf %296, %298 : vector<4x4xf32>
    %c0_50 = arith.constant 0 : index
    %c0_51 = arith.constant 0 : index
    %300 = vector.load %arg6[%c0_50, %c0_51] : memref<4x4xf32, #tpu.memory_space<vmem>>, vector<4x4xf32>
    tpu.vector_store %arg6[%c0_50, %c0_51], %299 {strides = array<i32>} : memref<4x4xf32, #tpu.memory_space<vmem>>, vector<4x4xf32>,
    return
  }
  func.func @transform_0(%arg0: i32) -> (i32, i32) {
    %c0_i32 = arith.constant 0 : i32
    %c0_i32_0 = arith.constant 0 : i32
    %c0_i32_1 = arith.constant 0 : i32
    return %c0_i32, %c0_i32_0 : i32, i32
  }
  func.func @transform_1(%arg0: i32) -> (i32, i32) {
    %c0_i32 = arith.constant 0 : i32
    %c0_i32_0 = arith.constant 0 : i32
    %c0_i32_1 = arith.constant 0 : i32
    return %c0_i32, %c0_i32_0 : i32, i32
  }
  func.func @transform_2(%arg0: i32) -> (i32, i32, i32) {
    %c0_i32 = arith.constant 0 : i32
    %c0_i32_0 = arith.constant 0 : i32
    %c0_i32_1 = arith.constant 0 : i32
    %c0_i32_2 = arith.constant 0 : i32
    return %c0_i32, %c0_i32_0, %c0_i32_1 : i32, i32, i32
  }
  func.func @transform_3(%arg0: i32) -> (i32, i32, i32) {
    %c0_i32 = arith.constant 0 : i32
    %c0_i32_0 = arith.constant 0 : i32
    %c0_i32_1 = arith.constant 0 : i32
    %c0_i32_2 = arith.constant 0 : i32
    return %c0_i32, %c0_i32_0, %c0_i32_1 : i32, i32, i32
  }
  func.func @transform_4(%arg0: i32) -> (i32, i32) {
    %c0_i32 = arith.constant 0 : i32
    %c0_i32_0 = arith.constant 0 : i32
    %c0_i32_1 = arith.constant 0 : i32
    return %c0_i32, %c0_i32_0 : i32, i32
  }
  func.func @transform_5(%arg0: i32) -> (i32, i32) {
    %c0_i32 = arith.constant 0 : i32
    %c0_i32_0 = arith.constant 0 : i32
    %c0_i32_1 = arith.constant 0 : i32
    return %c0_i32, %c0_i32_0 : i32, i32
  }
}

</mosaic_0001>

<bundles_post_ra>
// kernel: prediction_forward.1
= control target key start
LH: loop header
LB: loop body
LE: loop exit
PB: predicated region body
PF: predicated region fallthrough
CT: control target
= control target key end

     0   :  { %v1188_v0 = vmov 0.0   ;;  %vm1189_vm0 = vmmov 0   ;;  %v41_v2 = vlaneseq  ;;  %vm71_vm1 = vcmask 261120   ;;  %s1190_s7 = smov 64   ;;  %s1411_s3 = inlined_call_operand.vmem [shape: bf16[3,32,96], index: 3, kind: input, shape index: {}]   ;;  %s1412_s0 = inlined_call_operand.vmem [shape: bf16[32,32], index: 0, kind: input, shape index: {}]   ;;  %s1413_s4 = inlined_call_operand.vmem [shape: f32[2,96], index: 4, kind: input, shape index: {}]   ;;  %s1414_s1 = inlined_call_operand.vmem [shape: bf16[4,32], index: 1, kind: input, shape index: {}]   ;;  %s1415_s2 = inlined_call_operand.vmem [shape: f32[2,4,4], index: 2, kind: input, shape index: {}]   ;;  %s1416_s5 = inlined_call_operand.vmem [shape: f32[4,4], index: 5, kind: output, shape index: {}]  }
   0x1   :  { %1033 = vmatprep.subr.bf16.mxu1 %v1188_v0  ;;  %v1227_v1 = vld [vmem:[%s1411_s3 + $0x8] sm:$0xff]   ;;  %1037 = vmatprep.mubr.msk.bf16.mxu1 %vm1189_vm0, %v1188_v0  ;;  %v1234_v3 = vld [vmem:[%s1411_s3 + $0x18] sm:$0xff]   ;;  %v1240_v4 = vld [vmem:[%s1411_s3] sm:$0xff]   ;;  %v1191_v14 = vmov 0   ;;  %vm953_vm2 = vcmask 27648  }
   0x2   :  { %1025 = vmatprep.subr.bf16.mxu0 %v1227_v1  ;;  %v42_v5 = vshrl.u32 %v41_v2, 7  ;;  %1034 = vmatpush3.bf16.msra.mxu1 %v1234_v3  ;;  %v1247_v6 = vld [vmem:[%s1411_s3 + $0x10] sm:$0xff]   ;;  %v1130_v7 = vld [vmem:[%s1412_s0] sm:$0xff]   ;;  %v1131_v9 = vld [vmem:[%s1412_s0 + $0x8] sm:$0xff]   ;;  %s1192_s0 = smov 96  }
   0x3   :  { %1026 = vmatpush3.bf16.msra.mxu0 %v1227_v1  ;;  %1035 = vmatprep.subr.bf16.mxu1 %v1188_v0  ;;  %v40_v11 = vld [vmem:[%s1413_s4] sm:$0x3] }
   0x4   :  { %1027 = vmatprep.subr.bf16.mxu0 %v1240_v4  ;;  %v43_v8 = vsub.s32 1, %v42_v5  ;;  %v47_v10 = vsub.s32 0, %v42_v5  ;;  %1029 = vmatprep.mubr.msk.bf16.mxu0 %vm71_vm1, %v1130_v7 }
   0x6   :  { %1036 = vmatpush3.bf16.msra.mxu1 %v1247_v6  ;;  %v44_v12 = vrot.slane %v40_v11, %v43_v8  ;;  %v1263_v13 = vrot.slane %v40_v11, %v47_v10 }
   0x7   :  { %1028 = vmatpush3.bf16.msra.mxu0 %v1240_v4  ;;  %1049 = vmatprep.subr.bf16.mxu1 %v1188_v0 }
   0x8   :  { %1041 = vmatprep.subr.bf16.mxu0 %v1188_v0  ;;  %190 = vrot.lane.b32.xlu0 %v44_v12, %s1190_s7 }
   0x9   :  { %1038 = vmatmul.mubr.bf16.vlgmr.msra.gmra.mxu1 %v1191_v14 }
   0xa   :  { %1030 = vmatmul.mubr.msk.bf16.vlgmr.msra.gmra.mxu0 %vm71_vm1, %v1131_v9  ;;  %1050 = vmatpush3.bf16.msra.mxu1 %v1234_v3 }
   0xb   :  { %1042 = vmatpush3.bf16.msra.mxu0 %v1234_v3  ;;  %1045 = vmatprep.mubr.msk.bf16.mxu0 %vm1189_vm0, %v1188_v0 }
   0xc   :  { %1043 = vmatprep.subr.bf16.mxu0 %v1188_v0  ;;  %1051 = vmatprep.subr.bf16.mxu1 %v1188_v0 }
   0xd   :  { %1053 = vmatprep.mubr.msk.bf16.mxu1 %vm1189_vm0, %v1188_v0 }
   0xe   :  { %1052 = vmatpush3.bf16.msra.mxu1 %v1247_v6 }
   0xf   :  { %1044 = vmatpush3.bf16.msra.mxu0 %v1247_v6  ;;  %1065 = vmatprep.subr.bf16.mxu1 %v1188_v0 }
  0x10   :  { %1057 = vmatprep.subr.bf16.mxu0 %v1188_v0 }
  0x7a   :  { %v1281_v15 = vpop.permute.xlu0 %190 }
  0xc9   :  { %v176_v16 = vpop.f32.mrf.mxu1 }
  0xca   :  { %v193_v17 = vadd.f32 %v1281_v15, %v176_v16  ;;  %v1285_v21 = vpop.f32.mrf.mxu0 }
  0xcb   :  { %v1039_v18 = vpop.f32.mrf.mxu1 }
  0xcc   :  { %195 = vrot.lane.b32.xlu0 %v193_v17, %s1190_s7  ;;  %v112_v22 = vpop.f32.mrf.mxu0 }
  0xcd   :  { %v179_v19 = vpop.f32.mrf.mxu1  ;;  %v113_v23 = vadd.f32 %v112_v22, %v1263_v13 }
  0xce   :  { %v1298_v41 = vpop.f32.mrf.mxu0 }
  0xcf   :  { %v1040_v20 = vpop.f32.mrf.mxu1  ;;  %v182_v24 = vadd.f32 %v176_v16, %v113_v23 }
  0xd0   :  { %v115_v42 = vpop.f32.mrf.mxu0 }
  0xd1   :  { %v967_v25 = vmul.f32 -1.442695, %v182_v24  ;;  %v116_v17 = vadd.f32 %v115_v42, %v1263_v13 }
  0xd3   :  { %1134 = vpow2.f32 %v967_v25 }
  0xe0   :  { %v1135_v26 = vpop.eup %1134 }
  0xe1   :  { %v186_v27 = vadd.f32 1.0, %v1135_v26 }
  0xe3   :  { %1136 = vrcp.f32 %v186_v27 }
  0xf0   :  { %v1137_v28 = vpop.eup %1136 }
  0xf1   :  { %v205_v34 = vsub.f32 1.0, %v1137_v28  ;;  %v211_v36 = vmul.f32 0.0, %v1137_v28 }
 0x13e   :  { %v196_v29 = vpop.permute.xlu0 %195 }
 0x13f   :  { %v198_v30 = vmul.f32 %v1137_v28, %v196_v29 }
 0x141   :  { %200 = vrot.lane.b32.xlu1 %v198_v30, %s1190_s7 }
 0x1b3   :  { %v201_v31 = vpop.permute.xlu1 %200 }
 0x1b4   :  { %v203_v32 = vadd.f32 %v201_v31, %v113_v23 }
 0x1b6   :  { %1138 = vtanh.f32 %v203_v32 }
 0x1c3   :  { %v1139_v33 = vpop.eup %1138 }
 0x1c4   :  { %207 = vrot.lane.b32.xlu1 %v1139_v33, %s1192_s0 }
 0x236   :  { %v208_v35 = vpop.permute.xlu1 %207 }
 0x237   :  { %v210_v37 = vmul.f32 %v208_v35, %v205_v34 }
 0x239   :  { %v212_v38 = vadd.f32 %v211_v36, %v210_v37 }
 0x23b   :  { %v213_v39 = vpack.c.bf16 %v212_v38, %v212_v38  ;;  %v290_v60 = vrot.slane %v212_v38, 4 }
 0x23d   :  { %215 = vrot.lane.b32.xlu0 %v213_v39, %s1192_s0 }
 0x2af   :  { %v216_v40 = vpop.permute.xlu0 %215 }
 0x2b0   :  { %1046 = vmatmul.mubr.msk.bf16.vlgmr.msra.gmra.mxu0 %vm71_vm1, %v216_v40 }
 0x2b1   :  { %1058 = vmatpush3.bf16.msra.mxu0 %v1234_v3  ;;  %1061 = vmatprep.mubr.msk.bf16.mxu0 %vm1189_vm0, %v1188_v0 }
 0x2b2   :  { %1059 = vmatprep.subr.bf16.mxu0 %v1188_v0 }
 0x2b5   :  { %1060 = vmatpush3.bf16.msra.mxu0 %v1247_v6 }
 0x2b6   :  { %1073 = vmatprep.subr.bf16.mxu0 %v1188_v0 }
 0x370   :  { %v254_v43 = vpop.f32.mrf.mxu0 }
 0x371   :  { %v270_v44 = vadd.f32 %v254_v43, %v1281_v15  ;;  %v261_v49 = vrot.slane %v254_v43, 4 }
 0x372   :  { %v1047_v45 = vpop.f32.mrf.mxu0 }
 0x373   :  { %v272_v46 = vrot.slane %v270_v44, 4  ;;  %v263_v50 = vadd.f32 %v261_v49, %v113_v23 }
 0x374   :  { %v257_v47 = vpop.f32.mrf.mxu0 }
 0x375   :  { %273 = vrot.lane.b32.xlu1 %v272_v46, %s1190_s7  ;;  %v969_v51 = vmul.f32 -1.442695, %v263_v50 }
 0x376   :  { %v1048_v48 = vpop.f32.mrf.mxu0 }
 0x377   :  { %1140 = vpow2.f32 %v969_v51 }
 0x384   :  { %v1141_v52 = vpop.eup %1140 }
 0x385   :  { %v267_v53 = vadd.f32 1.0, %v1141_v52 }
 0x387   :  { %1142 = vrcp.f32 %v267_v53 }
 0x394   :  { %v1143_v54 = vpop.eup %1142 }
 0x395   :  { %v283_v61 = vsub.f32 1.0, %v1143_v54  ;;  %v292_v63 = vmul.f32 %v1143_v54, %v290_v60 }
 0x3e7   :  { %v274_v55 = vpop.permute.xlu1 %273 }
 0x3e8   :  { %v276_v56 = vmul.f32 %v1143_v54, %v274_v55 }
 0x3ea   :  { %278 = vrot.lane.b32.xlu0 %v276_v56, %s1190_s7 }
 0x45c   :  { %v279_v57 = vpop.permute.xlu0 %278 }
 0x45d   :  { %v281_v58 = vadd.f32 %v279_v57, %v113_v23 }
 0x45f   :  { %1144 = vtanh.f32 %v281_v58 }
 0x46c   :  { %v1145_v59 = vpop.eup %1144 }
 0x46d   :  { %285 = vrot.lane.b32.xlu1 %v1145_v59, %s1192_s0 }
 0x4df   :  { %v286_v62 = vpop.permute.xlu1 %285 }
 0x4e0   :  { %v288_v2 = vmul.f32 %v286_v62, %v283_v61 }
 0x4e2   :  { %v293_v5 = vadd.f32 %v292_v63, %v288_v2 }
 0x4e4   :  { %v294_v7 = vpack.c.bf16 %v293_v5, %v293_v5  ;;  %v368_v29 = vrot.slane %v293_v5, 4 }
 0x4e6   :  { %v296_v8 = vrot.slane %v294_v7, 2 }
 0x4e8   :  { %297 = vrot.lane.b32.xlu0 %v296_v8, %s1192_s0 }
 0x55a   :  { %v298_v9 = vpop.permute.xlu0 %297 }
 0x55b   :  { %1054 = vmatmul.mubr.msk.bf16.vlgmr.msra.gmra.mxu1 %vm71_vm1, %v298_v9 }
 0x55c   :  { %1066 = vmatpush3.bf16.msra.mxu1 %v1234_v3  ;;  %1069 = vmatprep.mubr.msk.bf16.mxu1 %vm1189_vm0, %v1188_v0 }
 0x55d   :  { %1067 = vmatprep.subr.bf16.mxu1 %v1188_v0 }
 0x560   :  { %1068 = vmatpush3.bf16.msra.mxu1 %v1247_v6 }
 0x561   :  { %1081 = vmatprep.subr.bf16.mxu1 %v1188_v0 }
 0x61b   :  { %v336_v10 = vpop.f32.mrf.mxu1 }
 0x61c   :  { %v349_v11 = vadd.f32 %v336_v10, %v1281_v15  ;;  %v342_v18 = vadd.f32 %v336_v10, %v116_v17  ;;  %v121_v10 = vadd.f32 %v1285_v21, %v1263_v13 }
 0x61d   :  { %v1055_v12 = vpop.f32.mrf.mxu1 }
 0x61e   :  { %351 = vrot.lane.b32.xlu1 %v349_v11, %s1190_s7  ;;  %v971_v19 = vmul.f32 -1.442695, %v342_v18 }
 0x61f   :  { %v339_v14 = vpop.f32.mrf.mxu1 }
 0x620   :  { %1146 = vpow2.f32 %v971_v19 }
 0x621   :  { %v1056_v16 = vpop.f32.mrf.mxu1 }
 0x62d   :  { %v1147_v20 = vpop.eup %1146 }
 0x62e   :  { %v346_v22 = vadd.f32 1.0, %v1147_v20 }
 0x630   :  { %1148 = vrcp.f32 %v346_v22 }
 0x63d   :  { %v1149_v23 = vpop.eup %1148 }
 0x63e   :  { %v361_v30 = vsub.f32 1.0, %v1149_v23  ;;  %v370_v32 = vmul.f32 %v1149_v23, %v368_v29 }
 0x690   :  { %v352_v24 = vpop.permute.xlu1 %351 }
 0x691   :  { %v354_v25 = vmul.f32 %v1149_v23, %v352_v24 }
 0x693   :  { %356 = vrot.lane.b32.xlu0 %v354_v25, %s1190_s7 }
 0x705   :  { %v357_v26 = vpop.permute.xlu0 %356 }
 0x706   :  { %v359_v27 = vadd.f32 %v357_v26, %v116_v17 }
 0x708   :  { %1150 = vtanh.f32 %v359_v27 }
 0x715   :  { %v1151_v28 = vpop.eup %1150 }
 0x716   :  { %363 = vrot.lane.b32.xlu1 %v1151_v28, %s1192_s0 }
 0x788   :  { %v364_v31 = vpop.permute.xlu1 %363 }
 0x789   :  { %v366_v33 = vmul.f32 %v364_v31, %v361_v30 }
 0x78b   :  { %v371_v34 = vadd.f32 %v370_v32, %v366_v33 }
 0x78d   :  { %v372_v35 = vpack.c.bf16 %v371_v34, %v371_v34  ;;  %v449_v55 = vrot.slane %v371_v34, 4 }
 0x78f   :  { %374 = vrot.lane.b32.xlu0 %v372_v35, %s1192_s0 }
 0x801   :  { %v375_v36 = vpop.permute.xlu0 %374 }
 0x802   :  { %1062 = vmatmul.mubr.msk.bf16.vlgmr.msra.gmra.mxu0 %vm71_vm1, %v375_v36 }
 0x803   :  { %1074 = vmatpush3.bf16.msra.mxu0 %v1234_v3  ;;  %1077 = vmatprep.mubr.msk.bf16.mxu0 %vm1189_vm0, %v1188_v0 }
 0x804   :  { %1075 = vmatprep.subr.bf16.mxu0 %v1188_v0 }
 0x807   :  { %1076 = vmatpush3.bf16.msra.mxu0 %v1247_v6 }
 0x808   :  { %1089 = vmatprep.subr.bf16.mxu0 %v1188_v0 }
 0x8c2   :  { %v413_v37 = vpop.f32.mrf.mxu0 }
 0x8c3   :  { %v429_v38 = vadd.f32 %v413_v37, %v1281_v15  ;;  %v420_v44 = vrot.slane %v413_v37, 4 }
 0x8c4   :  { %v1063_v39 = vpop.f32.mrf.mxu0 }
 0x8c5   :  { %v431_v40 = vrot.slane %v429_v38, 4  ;;  %v422_v45 = vadd.f32 %v420_v44, %v116_v17 }
 0x8c6   :  { %v416_v42 = vpop.f32.mrf.mxu0 }
 0x8c7   :  { %432 = vrot.lane.b32.xlu1 %v431_v40, %s1190_s7  ;;  %v973_v46 = vmul.f32 -1.442695, %v422_v45 }
 0x8c8   :  { %v1064_v43 = vpop.f32.mrf.mxu0 }
 0x8c9   :  { %1152 = vpow2.f32 %v973_v46 }
 0x8d6   :  { %v1153_v47 = vpop.eup %1152 }
 0x8d7   :  { %v426_v48 = vadd.f32 1.0, %v1153_v47 }
 0x8d9   :  { %1154 = vrcp.f32 %v426_v48 }
 0x8e6   :  { %v1155_v49 = vpop.eup %1154 }
 0x8e7   :  { %v442_v56 = vsub.f32 1.0, %v1155_v49  ;;  %v451_v58 = vmul.f32 %v1155_v49, %v449_v55 }
 0x939   :  { %v433_v50 = vpop.permute.xlu1 %432 }
 0x93a   :  { %v435_v51 = vmul.f32 %v1155_v49, %v433_v50 }
 0x93c   :  { %437 = vrot.lane.b32.xlu0 %v435_v51, %s1190_s7 }
 0x9ae   :  { %v438_v52 = vpop.permute.xlu0 %437 }
 0x9af   :  { %v440_v53 = vadd.f32 %v438_v52, %v116_v17 }
 0x9b1   :  { %1156 = vtanh.f32 %v440_v53 }
 0x9be   :  { %v1157_v54 = vpop.eup %1156 }
 0x9bf   :  { %444 = vrot.lane.b32.xlu1 %v1157_v54, %s1192_s0 }
 0xa31   :  { %v445_v57 = vpop.permute.xlu1 %444 }
 0xa32   :  { %v447_v59 = vmul.f32 %v445_v57, %v442_v56 }
 0xa34   :  { %v452_v60 = vadd.f32 %v451_v58, %v447_v59 }
 0xa36   :  { %v453_v61 = vpack.c.bf16 %v452_v60, %v452_v60  ;;  %v527_v24 = vrot.slane %v452_v60, 4 }
 0xa38   :  { %v455_v62 = vrot.slane %v453_v61, 2 }
 0xa3a   :  { %456 = vrot.lane.b32.xlu0 %v455_v62, %s1192_s0 }
 0xaac   :  { %v457_v63 = vpop.permute.xlu0 %456 }
 0xaad   :  { %1070 = vmatmul.mubr.msk.bf16.vlgmr.msra.gmra.mxu1 %vm71_vm1, %v457_v63 }
 0xaae   :  { %1082 = vmatpush3.bf16.msra.mxu1 %v1234_v3  ;;  %1085 = vmatprep.mubr.msk.bf16.mxu1 %vm1189_vm0, %v1188_v0 }
 0xaaf   :  { %1083 = vmatprep.subr.bf16.mxu1 %v1188_v0 }
 0xab2   :  { %1084 = vmatpush3.bf16.msra.mxu1 %v1247_v6 }
 0xab3   :  { %1097 = vmatprep.subr.bf16.mxu1 %v1188_v0 }
 0xb6d   :  { %v495_v2 = vpop.f32.mrf.mxu1 }
 0xb6e   :  { %v508_v5 = vadd.f32 %v495_v2, %v1281_v15  ;;  %v501_v11 = vadd.f32 %v495_v2, %v121_v10 }
 0xb6f   :  { %v1071_v7 = vpop.f32.mrf.mxu1 }
 0xb70   :  { %510 = vrot.lane.b32.xlu1 %v508_v5, %s1190_s7  ;;  %v975_v12 = vmul.f32 -1.442695, %v501_v11 }
 0xb71   :  { %v498_v8 = vpop.f32.mrf.mxu1 }
 0xb72   :  { %1158 = vpow2.f32 %v975_v12 }
 0xb73   :  { %v1072_v9 = vpop.f32.mrf.mxu1 }
 0xb7f   :  { %v1159_v14 = vpop.eup %1158 }
 0xb80   :  { %v505_v16 = vadd.f32 1.0, %v1159_v14 }
 0xb82   :  { %1160 = vrcp.f32 %v505_v16 }
 0xb8f   :  { %v1161_v17 = vpop.eup %1160 }
 0xb90   :  { %v520_v25 = vsub.f32 1.0, %v1161_v17  ;;  %v529_v26 = vmul.f32 %v1161_v17, %v527_v24 }
 0xbe2   :  { %v511_v18 = vpop.permute.xlu1 %510 }
 0xbe3   :  { %v513_v19 = vmul.f32 %v1161_v17, %v511_v18 }
 0xbe5   :  { %515 = vrot.lane.b32.xlu0 %v513_v19, %s1190_s7 }
 0xc57   :  { %v516_v20 = vpop.permute.xlu0 %515 }
 0xc58   :  { %v518_v22 = vadd.f32 %v516_v20, %v121_v10 }
 0xc5a   :  { %1162 = vtanh.f32 %v518_v22 }
 0xc67   :  { %v1163_v23 = vpop.eup %1162 }
 0xc68   :  { %522 = vrot.lane.b32.xlu1 %v1163_v23, %s1192_s0 }
 0xcda   :  { %v523_v21 = vpop.permute.xlu1 %522 }
 0xcdb   :  { %v525_v27 = vmul.f32 %v523_v21, %v520_v25 }
 0xcdd   :  { %v530_v28 = vadd.f32 %v529_v26, %v525_v27 }
 0xcdf   :  { %v531_v29 = vpack.c.bf16 %v530_v28, %v530_v28  ;;  %v608_v49 = vrot.slane %v530_v28, 4 }
 0xce1   :  { %533 = vrot.lane.b32.xlu0 %v531_v29, %s1192_s0 }
 0xd53   :  { %v534_v30 = vpop.permute.xlu0 %533 }
 0xd54   :  { %1078 = vmatmul.mubr.msk.bf16.vlgmr.msra.gmra.mxu0 %vm71_vm1, %v534_v30 }
 0xd55   :  { %1090 = vmatpush3.bf16.msra.mxu0 %v1234_v3  ;;  %1093 = vmatprep.mubr.msk.bf16.mxu0 %vm1189_vm0, %v1188_v0 }
 0xd56   :  { %1091 = vmatprep.subr.bf16.mxu0 %v1188_v0 }
 0xd59   :  { %1092 = vmatpush3.bf16.msra.mxu0 %v1247_v6 }
 0xd5a   :  { %1105 = vmatprep.subr.bf16.mxu0 %v1188_v0 }
 0xe14   :  { %v572_v31 = vpop.f32.mrf.mxu0 }
 0xe15   :  { %v588_v32 = vadd.f32 %v572_v31, %v1281_v15  ;;  %v579_v37 = vrot.slane %v572_v31, 4 }
 0xe16   :  { %v1079_v33 = vpop.f32.mrf.mxu0 }
 0xe17   :  { %v590_v34 = vrot.slane %v588_v32, 4  ;;  %v581_v38 = vadd.f32 %v579_v37, %v121_v10 }
 0xe18   :  { %v575_v35 = vpop.f32.mrf.mxu0 }
 0xe19   :  { %591 = vrot.lane.b32.xlu1 %v590_v34, %s1190_s7  ;;  %v977_v39 = vmul.f32 -1.442695, %v581_v38 }
 0xe1a   :  { %v1080_v36 = vpop.f32.mrf.mxu0 }
 0xe1b   :  { %1164 = vpow2.f32 %v977_v39  ;;  %v25_v36 = vld [vmem:[%s1414_s1] sm:$0x3] }
 0xe28   :  { %v1165_v40 = vpop.eup %1164 }
 0xe29   :  { %v585_v42 = vadd.f32 1.0, %v1165_v40 }
 0xe2b   :  { %1166 = vrcp.f32 %v585_v42 }
 0xe38   :  { %v1167_v43 = vpop.eup %1166 }
 0xe39   :  { %v601_v50 = vsub.f32 1.0, %v1167_v43  ;;  %v610_v52 = vmul.f32 %v1167_v43, %v608_v49 }
 0xe8b   :  { %v592_v44 = vpop.permute.xlu1 %591 }
 0xe8c   :  { %v594_v45 = vmul.f32 %v1167_v43, %v592_v44 }
 0xe8e   :  { %596 = vrot.lane.b32.xlu0 %v594_v45, %s1190_s7 }
 0xf00   :  { %v597_v46 = vpop.permute.xlu0 %596 }
 0xf01   :  { %v599_v47 = vadd.f32 %v597_v46, %v121_v10 }
 0xf03   :  { %1168 = vtanh.f32 %v599_v47 }
 0xf10   :  { %v1169_v48 = vpop.eup %1168 }
 0xf11   :  { %603 = vrot.lane.b32.xlu1 %v1169_v48, %s1192_s0 }
 0xf83   :  { %v604_v51 = vpop.permute.xlu1 %603 }
 0xf84   :  { %v606_v53 = vmul.f32 %v604_v51, %v601_v50 }
 0xf86   :  { %v611_v54 = vadd.f32 %v610_v52, %v606_v53 }
 0xf88   :  { %v612_v55 = vpack.c.bf16 %v611_v54, %v611_v54  ;;  %v686_v14 = vrot.slane %v611_v54, 4 }
 0xf8a   :  { %v614_v56 = vrot.slane %v612_v55, 2 }
 0xf8c   :  { %615 = vrot.lane.b32.xlu0 %v614_v56, %s1192_s0 }
 0xffe   :  { %v616_v57 = vpop.permute.xlu0 %615 }
 0xfff   :  { %1086 = vmatmul.mubr.msk.bf16.vlgmr.msra.gmra.mxu1 %vm71_vm1, %v616_v57 }
0x1000   :  { %1098 = vmatpush3.bf16.msra.mxu1 %v1227_v1  ;;  %1101 = vmatprep.mubr.msk.bf16.mxu1 %vm1189_vm0, %v1188_v0  ;;  %v124_v1 = vadd.f32 %v1298_v41, %v1263_v13 }
0x1001   :  { %1099 = vmatprep.subr.bf16.mxu1 %v1188_v0 }
0x1004   :  { %1100 = vmatpush3.bf16.msra.mxu1 %v1240_v4 }
0x1005   :  { %1113 = vmatprep.subr.bf16.mxu1 %v1188_v0 }
0x1007   :  { %1102 = vmatmul.mubr.msk.bf16.vlgmr.msra.gmra.mxu1 %vm71_vm1, %v25_v36 }
0x1008   :  { %1117 = vmatprep.mubr.msk.bf16.mxu1 %vm1189_vm0, %v1188_v0 }
0x10bf   :  { %v654_v58 = vpop.f32.mrf.mxu1 }
0x10c0   :  { %v667_v59 = vadd.f32 %v654_v58, %v1281_v15  ;;  %v660_v63 = vadd.f32 %v654_v58, %v124_v1 }
0x10c1   :  { %v1087_v60 = vpop.f32.mrf.mxu1 }
0x10c2   :  { %669 = vrot.lane.b32.xlu1 %v667_v59, %s1190_s7  ;;  %v979_v2 = vmul.f32 -1.442695, %v660_v63 }
0x10c3   :  { %v657_v61 = vpop.f32.mrf.mxu1 }
0x10c4   :  { %1170 = vpow2.f32 %v979_v2 }
0x10c5   :  { %v1088_v62 = vpop.f32.mrf.mxu1 }
0x10c7   :  { %v808_v47 = vpop.f32.mrf.mxu1 }
0x10c8   :  { %v809_v57 = vadd.f32 %v808_v47, %v1263_v13  ;;  %v1133_v13 = vld [vmem:[%s1411_s3 + $0x20] sm:$0xff]  }
0x10c9   :  { %v1103_v48 = vpop.f32.mrf.mxu1 }
0x10cb   :  { %v811_v49 = vpop.f32.mrf.mxu1 }
0x10cd   :  { %v1104_v50 = vpop.f32.mrf.mxu1 }
0x10d1   :  { %v1171_v5 = vpop.eup %1170 }
0x10d2   :  { %v664_v7 = vadd.f32 1.0, %v1171_v5  ;;  %v1132_v5 = vld [vmem:[%s1411_s3 + $0x28] sm:$0xff]  }
0x10d3   :  { %1114 = vmatpush3.bf16.msra.mxu1 %v1132_v5 }
0x10d4   :  { %1172 = vrcp.f32 %v664_v7  ;;  %1115 = vmatprep.subr.bf16.mxu1 %v1188_v0 }
0x10d7   :  { %1116 = vmatpush3.bf16.msra.mxu1 %v1133_v13 }
0x10e1   :  { %v1173_v4 = vpop.eup %1172 }
0x10e2   :  { %v679_v16 = vsub.f32 1.0, %v1173_v4  ;;  %v688_v17 = vmul.f32 %v1173_v4, %v686_v14 }
0x1134   :  { %v670_v8 = vpop.permute.xlu1 %669 }
0x1135   :  { %v672_v9 = vmul.f32 %v1173_v4, %v670_v8 }
0x1137   :  { %674 = vrot.lane.b32.xlu0 %v672_v9, %s1190_s7 }
0x11a9   :  { %v675_v10 = vpop.permute.xlu0 %674 }
0x11aa   :  { %v677_v11 = vadd.f32 %v675_v10, %v124_v1 }
0x11ac   :  { %1174 = vtanh.f32 %v677_v11 }
0x11b9   :  { %v1175_v12 = vpop.eup %1174 }
0x11ba   :  { %681 = vrot.lane.b32.xlu1 %v1175_v12, %s1192_s0 }
0x122c   :  { %v682_v41 = vpop.permute.xlu1 %681 }
0x122d   :  { %v684_v18 = vmul.f32 %v682_v41, %v679_v16  ;;  %v27_v41 = vld [vmem:[%s1415_s2 + $0x4] sm:$0xf] }
0x122f   :  { %v689_v19 = vadd.f32 %v688_v17, %v684_v18 }
0x1231   :  { %v690_v20 = vpack.c.bf16 %v689_v19, %v689_v19  ;;  %v767_v38 = vrot.slane %v689_v19, 4 }
0x1233   :  { %692 = vrot.lane.b32.xlu0 %v690_v20, %s1192_s0 }
0x12a5   :  { %v693_v22 = vpop.permute.xlu0 %692 }
0x12a6   :  { %1094 = vmatmul.mubr.msk.bf16.vlgmr.msra.gmra.mxu0 %vm71_vm1, %v693_v22 }
0x12a7   :  { %1106 = vmatpush3.bf16.msra.mxu0 %v1234_v3  ;;  %1109 = vmatprep.mubr.msk.bf16.mxu0 %vm1189_vm0, %v1188_v0 }
0x12a8   :  { %1107 = vmatprep.subr.bf16.mxu0 %v1188_v0  ;;  %v26_v0 = vld [vmem:[%s1415_s2] sm:$0xf] }
0x12ab   :  { %1108 = vmatpush3.bf16.msra.mxu0 %v1247_v6 }
0x1366   :  { %v731_v23 = vpop.f32.mrf.mxu0 }
0x1367   :  { %v747_v24 = vadd.f32 %v731_v23, %v1281_v15  ;;  %v738_v28 = vrot.slane %v731_v23, 4 }
0x1368   :  { %v1095_v25 = vpop.f32.mrf.mxu0 }
0x1369   :  { %v749_v21 = vrot.slane %v747_v24, 4  ;;  %v740_v29 = vadd.f32 %v738_v28, %v124_v1 }
0x136a   :  { %v734_v26 = vpop.f32.mrf.mxu0 }
0x136b   :  { %750 = vrot.lane.b32.xlu1 %v749_v21, %s1190_s7  ;;  %v981_v30 = vmul.f32 -1.442695, %v740_v29 }
0x136c   :  { %v1096_v27 = vpop.f32.mrf.mxu0 }
0x136d   :  { %1176 = vpow2.f32 %v981_v30 }
0x137a   :  { %v1177_v3 = vpop.eup %1176 }
0x137b   :  { %v744_v31 = vadd.f32 1.0, %v1177_v3 }
0x137d   :  { %1178 = vrcp.f32 %v744_v31 }
0x138a   :  { %v1179_v32 = vpop.eup %1178 }
0x138b   :  { %v760_v39 = vsub.f32 1.0, %v1179_v32  ;;  %v769_v42 = vmul.f32 %v1179_v32, %v767_v38 }
0x13dd   :  { %v751_v33 = vpop.permute.xlu1 %750 }
0x13de   :  { %v753_v34 = vmul.f32 %v1179_v32, %v751_v33 }
0x13e0   :  { %755 = vrot.lane.b32.xlu0 %v753_v34, %s1190_s7 }
0x1452   :  { %v756_v6 = vpop.permute.xlu0 %755 }
0x1453   :  { %v758_v35 = vadd.f32 %v756_v6, %v124_v1 }
0x1455   :  { %1180 = vtanh.f32 %v758_v35 }
0x1462   :  { %v1181_v37 = vpop.eup %1180 }
0x1463   :  { %762 = vrot.lane.b32.xlu1 %v1181_v37, %s1192_s0 }
0x14d5   :  { %v763_v40 = vpop.permute.xlu1 %762 }
0x14d6   :  { %v765_v43 = vmul.f32 %v763_v40, %v760_v39 }
0x14d8   :  { %v770_v44 = vadd.f32 %v769_v42, %v765_v43 }
0x14da   :  { %v814_v45 = vpack.c.bf16 %v770_v44, %v770_v44  ;;  %v888_v4 = vrot.slane %v770_v44, 4 }
0x14dc   :  { %v816_v46 = vrot.slane %v814_v45, 2 }
0x14de   :  { %817 = vrot.lane.b32.xlu0 %v816_v46, %s1192_s0 }
0x1550   :  { %v818_v51 = vpop.permute.xlu0 %817 }
0x1551   :  { %1110 = vmatmul.mubr.msk.bf16.vlgmr.msra.gmra.mxu0 %vm71_vm1, %v818_v51 }
0x1611   :  { %v856_v52 = vpop.f32.mrf.mxu0 }
0x1612   :  { %v869_v53 = vadd.f32 %v856_v52, %v1281_v15  ;;  %v862_v58 = vadd.f32 %v856_v52, %v809_v57 }
0x1613   :  { %v1111_v54 = vpop.f32.mrf.mxu0 }
0x1614   :  { %871 = vrot.lane.b32.xlu1 %v869_v53, %s1190_s7  ;;  %v984_v59 = vmul.f32 -1.442695, %v862_v58 }
0x1615   :  { %v859_v55 = vpop.f32.mrf.mxu0 }
0x1616   :  { %1182 = vpow2.f32 %v984_v59 }
0x1617   :  { %v1112_v56 = vpop.f32.mrf.mxu0 }
0x1623   :  { %v1183_v60 = vpop.eup %1182 }
0x1624   :  { %v866_v61 = vadd.f32 1.0, %v1183_v60 }
0x1626   :  { %1184 = vrcp.f32 %v866_v61 }
0x1633   :  { %v1185_v62 = vpop.eup %1184 }
0x1634   :  { %v881_v8 = vsub.f32 1.0, %v1185_v62  ;;  %v890_v10 = vmul.f32 %v1185_v62, %v888_v4 }
0x1686   :  { %v872_v1 = vpop.permute.xlu1 %871 }
0x1687   :  { %v874_v63 = vmul.f32 %v1185_v62, %v872_v1 }
0x1689   :  { %876 = vrot.lane.b32.xlu0 %v874_v63, %s1190_s7 }
0x16fb   :  { %v877_v2 = vpop.permute.xlu0 %876 }
0x16fc   :  { %v879_v15 = vadd.f32 %v877_v2, %v809_v57 }
0x16fe   :  { %1186 = vtanh.f32 %v879_v15 }
0x170b   :  { %v1187_v7 = vpop.eup %1186 }
0x170c   :  { %883 = vrot.lane.b32.xlu1 %v1187_v7, %s1192_s0 }
0x177e   :  { %v884_v9 = vpop.permute.xlu1 %883 }
0x177f   :  { %v886_v11 = vmul.f32 %v884_v9, %v881_v8 }
0x1781   :  { %v891_v12 = vadd.f32 %v890_v10, %v886_v11 }
0x1783   :  { %v892_v14 = vpack.c.bf16 %v891_v12, %v891_v12 }
0x1785   :  { %894 = vrot.lane.b32.xlu0 %v892_v14, %s1192_s0 }
0x17f7   :  { %v895_v16 = vpop.permute.xlu0 %894 }
0x17f8   :  { %1118 = vmatmul.mubr.msk.bf16.vlgmr.msra.gmra.mxu1 %vm71_vm1, %v895_v16 }
0x18b8   :  { %v945_v17 = vpop.f32.mrf.mxu1 }
0x18b9   :  { %v951_v18 = vmul.f32 %v945_v17, %v26_v0 }
0x18ba   :  { %v1119_v19 = vpop.f32.mrf.mxu1 }
0x18bb   :  { %v952_v20 = vadd.f32 %v951_v18, %v27_v41 }
0x18bc   :  { %v948_v22 = vpop.f32.mrf.mxu1 }
0x18bd   :  { %954 = vst.msk [vmem:[%s1416_s5] sm:$0xf] %vm953_vm2, %v952_v20 }
0x18be   :  { %v1120_v23 = vpop.f32.mrf.mxu1 }

</bundles_post_ra>
